<compile_context>
chip_gen: v6e
topology: v6e:2x2x1
jax: 0.10.0
libtpu: 0.0.40
codegen_flags: <defaults>
</compile_context>

<pallas_src>
import functools

import jax
import jax.numpy as jnp
from jax import lax
from jax.experimental import pallas as pl
from jax.experimental.pallas import tpu as pltpu


def _round_up(x, m):
    return ((x + m - 1) // m) * m


def _pick_tile(n, preferred):
    for t in preferred:
        if t <= n and n % t == 0:
            return t
    return n


def _vmem_limit_bytes(needed):
    """Scoped-VMEM limit: 2x the computed footprint + headroom, clamped to HW."""
    try:
        cap = int(pltpu.get_tpu_info().vmem_capacity_bytes)
    except Exception:
        cap = 64 * 1024 * 1024                     # conservative: v7x per-TC
    limit = max(int(needed) * 2 + (8 << 20), 32 << 20)
    return int(min(limit, cap - (4 << 20)))


# ---------------------------------------------------------------------------
# Pass 1: K / V projections (1x1 convs == channel matmuls), computed once per
# position so they are never recomputed for different query tiles.
# ---------------------------------------------------------------------------
def _kv_proj_kernel(x_ref, wk_ref, bk_ref, wv_ref, k_ref, v_ref):
    cdt = k_ref.dtype
    xc = x_ref[0].astype(cdt)                                          # (C, tp)
    k = jnp.dot(wk_ref[...], xc, preferred_element_type=jnp.float32)   # (Cqk, tp)
    k = k + bk_ref[...]                                                # (Cqk, 1) bcast
    v = jnp.dot(wv_ref[...], xc, preferred_element_type=jnp.float32)   # (C, tp)
    # bv is folded into the attention epilogue (exact: softmax rows sum to 1).
    k_ref[0] = k.astype(cdt)
    v_ref[0] = v.astype(cdt)


# ---------------------------------------------------------------------------
# Pass 2: flash attention with online softmax.  K/V are VMEM-resident per
# batch; the current kv tile is sliced with pl.ds.  Scores kept transposed
# (tk, tq) so softmax state and the accumulator broadcast along sublanes.
# ---------------------------------------------------------------------------
def _flash_attn_kernel(x_ref, k_ref, v_ref, wq_ref, bq_ref, bv_ref, gamma_ref,
                       out_ref, q_s, m_s, l_s, acc_s, *, tk, exp_dtype):
    ki = pl.program_id(2)
    nk = pl.num_programs(2)
    cdt = q_s.dtype

    # Once per (batch, q-tile): project Q for this tile, reset softmax state.
    # The kv axis is the trailing "arbitrary" grid dim, so for a fixed (b, q)
    # all kv steps run consecutively on one core -> the ki==0 gate is safe
    # under megacore splitting of the parallel axes.
    @pl.when(ki == 0)
    def _init():
        xq = x_ref[0].astype(cdt)                                      # (C, tq)
        q = jnp.dot(wq_ref[...], xq, preferred_element_type=jnp.float32)
        q_s[...] = (q + bq_ref[...]).astype(cdt)                       # (Cqk, tq)
        m_s[...] = jnp.full_like(m_s, -jnp.inf)
        l_s[...] = jnp.zeros_like(l_s)
        acc_s[...] = jnp.zeros_like(acc_s)

    # Slice the current kv tile out of the resident (Cqk, N)/(C, N) blocks.
    start = pl.multiple_of(ki * tk, tk)
    k = k_ref[0, :, pl.ds(start, tk)]                                  # (Cqk, tk)
    v = v_ref[0, :, pl.ds(start, tk)]                                  # (C,  tk)

    # s[j, i] = <k_j, q_i>; contraction over the (small) padded channel dim.
    s = lax.dot_general(k, q_s[...], (((0,), (0,)), ((), ())),
                        preferred_element_type=jnp.float32)            # (tk, tq)

    m_prev = m_s[...]                                                  # (1, tq)
    m_new = jnp.maximum(m_prev, jnp.max(s, axis=0, keepdims=True))
    alpha = jnp.exp(m_prev - m_new)                                    # (1, tq) f32
    # Probabilities in exp_dtype (bf16 on v6e/v7x doubles EUP throughput and
    # feeds the MXU directly); statistics stay f32.
    p = jnp.exp((s - m_new).astype(exp_dtype))                         # (tk, tq)
    l_s[...] = alpha * l_s[...] + jnp.sum(p.astype(jnp.float32), axis=0,
                                          keepdims=True)
    acc_s[...] = alpha * acc_s[...] + jnp.dot(
        v, p.astype(cdt), preferred_element_type=jnp.float32)          # (C, tq)
    m_s[...] = m_new

    # Once per (batch, q-tile): deferred normalization + value bias + residual.
    @pl.when(ki == nk - 1)
    def _finalize():
        inv_l = pl.reciprocal(l_s[...], approx=True)                   # EUP, (1, tq)
        attn_out = acc_s[...] * inv_l + bv_ref[...]                    # (C, tq)
        out_ref[0] = (gamma_ref[0] * attn_out
                      + x_ref[0].astype(jnp.float32)).astype(out_ref.dtype)


def self_attn_forward(x_nchw, params, *, compute_dtype=jnp.float32,
                      exp_in_bf16=None, block_q=None, block_k=None,
                      block_p=None):
    """SAGAN self-attention forward.  x_nchw: (B, C, W, H) f32 -> (B, C, W, H) f32.

    compute_dtype: dtype fed to the MXU and used for K/V storage.  bfloat16 is
    recommended on all of v5e/v6e/v7x (halves K/V bandwidth, bf16-native MXU);
    float32 is the exact path.  Accumulation is float32 either way.
    exp_in_bf16: compute softmax probabilities with a bf16 exp (default: True
    when compute_dtype is bfloat16).  Set False on v5e (no bf16 EUP).
    """
    B, C, W, H = x_nchw.shape
    N = W * H
    C8 = params["wq"].shape[0]
    assert C8 >= 1, "in_dim must be >= 8"
    if N % 128 != 0:
        # TODO(synk): add a padding/masking path for N not divisible by 128.
        raise ValueError(f"W*H={N} must be a multiple of 128 for this kernel")

    cdt = jnp.dtype(compute_dtype)
    f32 = jnp.float32
    exp_bf16 = (cdt == jnp.bfloat16) if exp_in_bf16 is None else bool(exp_in_bf16)
    exp_dtype = jnp.bfloat16 if exp_bf16 else jnp.float32

    # Pad the tiny C//8 query/key channel dim only to the sublane minimum
    # (16 for bf16, 8 for f32).  Zero rows are mathematically inert.
    sub = 16 if cdt == jnp.bfloat16 else 8
    Cqk = _round_up(C8, sub)

    tp = block_p or _pick_tile(N, (4096, 2048, 1024, 512, 256, 128))
    tq = block_q or _pick_tile(N, (512, 256, 128))
    tk = block_k or _pick_tile(N, (256, 128))
    # Keep both v7x TensorCores busy: parallel work is B * nq.
    if block_q is None:
        while B * (N // tq) < 2 and tq >= 256 and (tq // 2) % 128 == 0:
            tq //= 2
    assert N % tp == 0 and N % tq == 0 and N % tk == 0

    # Parameter plumbing in the wrapper (free): pre-pad / pre-lay-out the
    # weights so the kernels contain no transposes.
    def pad_qk(w, b):
        wp = jnp.zeros((Cqk, C), f32).at[:C8, :].set(w.astype(f32))
        bp = jnp.zeros((Cqk, 1), f32).at[:C8, 0].set(b.reshape(-1).astype(f32))
        return wp.astype(cdt), bp

    wq_p, bq_p = pad_qk(params["wq"], params["bq"])
    wk_p, bk_p = pad_qk(params["wk"], params["bk"])
    wv_p = params["wv"].astype(cdt)                       # (C, C)
    bv_p = params["bv"].reshape(C, 1).astype(f32)         # (C, 1)
    gamma = params["gamma"].reshape(-1)[:1].astype(f32)   # (1,) scalar -> SMEM

    # NCHW -> (B, C, N) is a layout-preserving reshape: no HBM transpose.
    x = x_nchw.reshape(B, C, N)

    cdt_bytes = cdt.itemsize

    # ---------------- pass 1: K / V projections ----------------
    vmem1 = (2 * C * tp * 4                                   # x tiles (f32)
             + 2 * (Cqk + C) * tp * cdt_bytes                 # K/V out tiles
             + 2 * (Cqk * C + C * C + Cqk) * 4)               # weights/biases
    kv_grid = pltpu.PrefetchScalarGridSpec(
        num_scalar_prefetch=0,
        grid=(B, N // tp),
        in_specs=[
            pl.BlockSpec((1, C, tp), lambda b, p: (b, 0, p)),          # x
            pl.BlockSpec((Cqk, C), lambda b, p: (0, 0)),               # Wk (padded)
            pl.BlockSpec((Cqk, 1), lambda b, p: (0, 0)),               # bk (padded)
            pl.BlockSpec((C, C), lambda b, p: (0, 0)),                 # Wv
        ],
        out_specs=[
            pl.BlockSpec((1, Cqk, tp), lambda b, p: (b, 0, p)),        # K
            pl.BlockSpec((1, C, tp), lambda b, p: (b, 0, p)),          # V
        ],
    )
    k_hbm, v_hbm = pl.pallas_call(
        _kv_proj_kernel,
        out_shape=(jax.ShapeDtypeStruct((B, Cqk, N), cdt),
                   jax.ShapeDtypeStruct((B, C, N), cdt)),
        grid_spec=kv_grid,
        compiler_params=pltpu.CompilerParams(
            dimension_semantics=("parallel", "parallel"),
            vmem_limit_bytes=_vmem_limit_bytes(vmem1)),
        cost_estimate=pl.CostEstimate(
            flops=int(2 * B * N * C * (Cqk + C)),
            transcendentals=0,
            bytes_accessed=int(B * N * (4 * C + cdt_bytes * (Cqk + C)))),
    )(x, wk_p, bk_p, wv_p)

    # ---------------- pass 2: flash attention + residual ----------------
    nq, nk = N // tq, N // tk
    vmem2 = (2 * C * tq * 4                                   # x tiles (f32)
             + 2 * (Cqk + C) * N * cdt_bytes                  # resident K/V
             + 2 * C * tq * 4                                 # out tiles
             + 2 * (Cqk * C + Cqk + C) * 4                    # weights/biases
             + Cqk * tq * cdt_bytes + 2 * tq * 4 + C * tq * 4 # scratch
             + 4 * tk * tq * 4)                               # s/p headroom
    attn_grid = pltpu.PrefetchScalarGridSpec(
        num_scalar_prefetch=0,
        grid=(B, nq, nk),
        in_specs=[
            pl.BlockSpec((1, C, tq), lambda b, q, k: (b, 0, q)),       # x (Q proj + residual)
            pl.BlockSpec((1, Cqk, N), lambda b, q, k: (b, 0, 0)),      # K (resident per batch)
            pl.BlockSpec((1, C, N), lambda b, q, k: (b, 0, 0)),        # V (resident per batch)
            pl.BlockSpec((Cqk, C), lambda b, q, k: (0, 0)),            # Wq (padded)
            pl.BlockSpec((Cqk, 1), lambda b, q, k: (0, 0)),            # bq (padded)
            pl.BlockSpec((C, 1), lambda b, q, k: (0, 0)),              # bv
            pl.BlockSpec(memory_space=pltpu.MemorySpace.SMEM),         # gamma (scalar)
        ],
        out_specs=pl.BlockSpec((1, C, tq), lambda b, q, k: (b, 0, q)),
        scratch_shapes=[
            pltpu.VMEM((Cqk, tq), cdt),    # Q tile
            pltpu.VMEM((1, tq), f32),      # running max m
            pltpu.VMEM((1, tq), f32),      # running denominator l
            pltpu.VMEM((C, tq), f32),      # unnormalized output accumulator
        ],
    )
    out = pl.pallas_call(
        functools.partial(_flash_attn_kernel, tk=tk, exp_dtype=exp_dtype),
        out_shape=jax.ShapeDtypeStruct((B, C, N), jnp.float32),
        grid_spec=attn_grid,
        compiler_params=pltpu.CompilerParams(
            dimension_semantics=("parallel", "parallel", "arbitrary"),
            vmem_limit_bytes=_vmem_limit_bytes(vmem2)),
        cost_estimate=pl.CostEstimate(
            flops=int(2 * B * N * N * (Cqk + C) + 2 * B * N * Cqk * C),
            transcendentals=int(B * N * N),
            bytes_accessed=int(B * N * C * 8
                               + B * N * (Cqk + C) * cdt_bytes)),
    )(x, k_hbm, v_hbm, wq_p, bq_p, bv_p, gamma)

    return out.reshape(B, C, W, H)


def init_params(key, in_dim):
    """Deterministic parameter init matching Self_Attn.__init__ shapes.
    Conv2d(k=1) weights (out_ch, in_ch, 1, 1) are stored squeezed as (out_ch, in_ch).
    gamma is a scalar (torch init is 0; 0.5 here so the attention path contributes)."""
    c8 = in_dim // 8
    k1, k2, k3, k4, k5, k6 = jax.random.split(key, 6)
    return {
        "wq": jax.random.normal(k1, (c8, in_dim), jnp.float32) * 0.1,
        "bq": jax.random.normal(k2, (1, c8), jnp.float32) * 0.1,
        "wk": jax.random.normal(k3, (c8, in_dim), jnp.float32) * 0.1,
        "bk": jax.random.normal(k4, (1, c8), jnp.float32) * 0.1,
        "wv": jax.random.normal(k5, (in_dim, in_dim), jnp.float32) * 0.1,
        "bv": jax.random.normal(k6, (1, in_dim), jnp.float32) * 0.1,
        "gamma": jnp.full((1, 1), 0.5, jnp.float32),
    }


def ref_forward(x, params):
    """Plain-JAX reference replicating the PyTorch forward exactly."""
    B, C, W, H = x.shape
    N = W * H
    xf = x.reshape(B, C, N)                                           # (B, C, N)
    q = jnp.einsum("oc,bcn->bon", params["wq"], xf) + params["bq"].reshape(1, -1, 1)
    k = jnp.einsum("oc,bcn->bon", params["wk"], xf) + params["bk"].reshape(1, -1, 1)
    v = jnp.einsum("oc,bcn->bon", params["wv"], xf) + params["bv"].reshape(1, -1, 1)
    proj_query = jnp.transpose(q, (0, 2, 1))                          # (B, N, C8)
    energy = jnp.einsum("bic,bcj->bij", proj_query, k)                # (B, N, N)
    attention = jax.nn.softmax(energy, axis=-1)
    out = jnp.einsum("bcj,bij->bci", v, attention)                    # (B, C, N)
    out = out.reshape(B, C, W, H)
    return params["gamma"][0, 0] * out + x


if __name__ == "__main__":
    key = jax.random.PRNGKey(0)
    kx, kp = jax.random.split(key)

    B, C, W, H = 2, 16, 16, 16        # in_dim=16 -> query/key channels = 2, N = 256
    x = jax.random.normal(kx, (B, C, W, H), jnp.float32)
    params = init_params(kp, C)

    ref = ref_forward(x, params)

    # f32 exact path; force 128-wide tiles so the online-softmax accumulation
    # runs over a real (2 q-tiles x 2 kv-tiles) grid with resident K/V slicing.
    out = self_attn_forward(x, params, compute_dtype=jnp.float32,
                            block_q=128, block_k=128, block_p=128)
    out = jax.block_until_ready(out)
    assert out.shape == (B, C, W, H)
    assert jnp.allclose(out, ref, rtol=5e-3, atol=5e-3), (
        "f32 kernel mismatch vs reference: max abs err "
        f"{jnp.max(jnp.abs(out - ref))}")

    # Default tile selection path (tq=tk=tp=256 here): single-tile sweep.
    out_d = self_attn_forward(x, params, compute_dtype=jnp.float32)
    out_d = jax.block_until_ready(out_d)
    assert jnp.allclose(out_d, ref, rtol=5e-3, atol=5e-3), (
        "f32 default-tile kernel mismatch vs reference: max abs err "
        f"{jnp.max(jnp.abs(out_d - ref))}")

    # bf16 MXU inputs / bf16 exp / f32 statistics (v6e / v7x path).
    out_bf16 = self_attn_forward(x, params, compute_dtype=jnp.bfloat16,
                                 block_q=128, block_k=128, block_p=128)
    out_bf16 = jax.block_until_ready(out_bf16)
    assert jnp.allclose(out_bf16, ref, rtol=5e-2, atol=5e-2), (
        "bf16 kernel mismatch vs reference: max abs err "
        f"{jnp.max(jnp.abs(out_bf16 - ref))}")

    # bf16 storage/MXU with f32 exp (v5e path: no bf16 EUP).
    out_v5e = self_attn_forward(x, params, compute_dtype=jnp.bfloat16,
                                exp_in_bf16=False,
                                block_q=128, block_k=128, block_p=128)
    out_v5e = jax.block_until_ready(out_v5e)
    assert jnp.allclose(out_v5e, ref, rtol=5e-2, atol=5e-2), (
        "bf16-storage/f32-exp kernel mismatch vs reference: max abs err "
        f"{jnp.max(jnp.abs(out_v5e - ref))}")

    print("KERNEL_OK")
</pallas_src>

<mosaic_0001>
module attributes {stable_mosaic.version = 11 : i64} {
  func.func @_kv_proj_kernel(%arg0: i32, %arg1: i32, %arg2: memref<1x16x128xf32, #tpu.memory_space<vmem>>, %arg3: memref<8x16xf32, #tpu.memory_space<vmem>>, %arg4: memref<8x1xf32, #tpu.memory_space<vmem>>, %arg5: memref<16x16xf32, #tpu.memory_space<vmem>>, %arg6: memref<1x8x128xf32, #tpu.memory_space<vmem>>, %arg7: memref<1x16x128xf32, #tpu.memory_space<vmem>>) attributes {dimension_semantics = [#tpu.dimension_semantics<parallel>, #tpu.dimension_semantics<parallel>], iteration_bounds = array<i64: 2, 2>, scalar_prefetch = 0 : i64, scratch_operands = 0 : i64, tpu.core_type = #tpu.core_type<tc>, window_params = [{transform_indices = @transform_0, window_bounds = array<i64: 1, 16, 128>}, {pipeline_mode = #tpu.pipeline_mode<synchronous>, transform_indices = @transform_1, window_bounds = array<i64: 8, 16>}, {pipeline_mode = #tpu.pipeline_mode<synchronous>, transform_indices = @transform_2, window_bounds = array<i64: 8, 1>}, {pipeline_mode = #tpu.pipeline_mode<synchronous>, transform_indices = @transform_3, window_bounds = array<i64: 16, 16>}, {transform_indices = @transform_4, window_bounds = array<i64: 1, 8, 128>}, {transform_indices = @transform_5, window_bounds = array<i64: 1, 16, 128>}]} {
    %c0 = arith.constant 0 : index
    %c0_0 = arith.constant 0 : index
    %c0_1 = arith.constant 0 : index
    %0 = vector.load %arg2[%c0, %c0_0, %c0_1] : memref<1x16x128xf32, #tpu.memory_space<vmem>>, vector<1x16x128xf32>
    %1 = vector.shape_cast %0 : vector<1x16x128xf32> to vector<16x128xf32>
    %c0_2 = arith.constant 0 : index
    %c0_3 = arith.constant 0 : index
    %2 = vector.load %arg3[%c0_2, %c0_3] : memref<8x16xf32, #tpu.memory_space<vmem>>, vector<8x16xf32>
    %cst = arith.constant dense<0.000000e+00> : vector<8x128xf32>
    %3 = tpu.matmul %2, %1, %cst {dimension_numbers = #tpu.dot_dimension_numbers<[1], [0], [0], [1], [0, 0, 1, 1], [], []>} : vector<8x16xf32>, vector<16x128xf32>, vector<8x128xf32> -> vector<8x128xf32>
    %c0_4 = arith.constant 0 : index
    %c0_5 = arith.constant 0 : index
    %4 = vector.load %arg4[%c0_4, %c0_5] : memref<8x1xf32, #tpu.memory_space<vmem>>, vector<8x1xf32>
    %5 = vector.broadcast %4 : vector<8x1xf32> to vector<8x128xf32>
    %6 = arith.addf %3, %5 : vector<8x128xf32>
    %c0_6 = arith.constant 0 : index
    %c0_7 = arith.constant 0 : index
    %7 = vector.load %arg5[%c0_6, %c0_7] : memref<16x16xf32, #tpu.memory_space<vmem>>, vector<16x16xf32>
    %cst_8 = arith.constant dense<0.000000e+00> : vector<16x128xf32>
    %8 = tpu.matmul %7, %1, %cst_8 {dimension_numbers = #tpu.dot_dimension_numbers<[1], [0], [0], [1], [0, 0, 1, 1], [], []>} : vector<16x16xf32>, vector<16x128xf32>, vector<16x128xf32> -> vector<16x128xf32>
    %c0_9 = arith.constant 0 : index
    %c0_10 = arith.constant 0 : index
    %c0_11 = arith.constant 0 : index
    %9 = vector.load %arg6[%c0_9, %c0_10, %c0_11] : memref<1x8x128xf32, #tpu.memory_space<vmem>>, vector<1x8x128xf32>
    %10 = vector.shape_cast %9 : vector<1x8x128xf32> to vector<8x128xf32>
    %11 = vector.shape_cast %6 : vector<8x128xf32> to vector<1x8x128xf32>
    tpu.vector_store %arg6[%c0_9, %c0_10, %c0_11], %11 {strides = array<i32>} : memref<1x8x128xf32, #tpu.memory_space<vmem>>, vector<1x8x128xf32>,
    %c0_12 = arith.constant 0 : index
    %c0_13 = arith.constant 0 : index
    %c0_14 = arith.constant 0 : index
    %12 = vector.load %arg7[%c0_12, %c0_13, %c0_14] : memref<1x16x128xf32, #tpu.memory_space<vmem>>, vector<1x16x128xf32>
    %13 = vector.shape_cast %12 : vector<1x16x128xf32> to vector<16x128xf32>
    %14 = vector.shape_cast %8 : vector<16x128xf32> to vector<1x16x128xf32>
    tpu.vector_store %arg7[%c0_12, %c0_13, %c0_14], %14 {strides = array<i32>} : memref<1x16x128xf32, #tpu.memory_space<vmem>>, vector<1x16x128xf32>,
    return
  }
  func.func @transform_0(%arg0: i32, %arg1: i32) -> (i32, i32, i32) {
    %c0_i32 = arith.constant 0 : i32
    %c0_i32_0 = arith.constant 0 : i32
    return %arg0, %c0_i32, %arg1 : i32, i32, i32
  }
  func.func @transform_1(%arg0: i32, %arg1: i32) -> (i32, i32) {
    %c0_i32 = arith.constant 0 : i32
    %c0_i32_0 = arith.constant 0 : i32
    %c0_i32_1 = arith.constant 0 : i32
    return %c0_i32, %c0_i32_0 : i32, i32
  }
  func.func @transform_2(%arg0: i32, %arg1: i32) -> (i32, i32) {
    %c0_i32 = arith.constant 0 : i32
    %c0_i32_0 = arith.constant 0 : i32
    %c0_i32_1 = arith.constant 0 : i32
    return %c0_i32, %c0_i32_0 : i32, i32
  }
  func.func @transform_3(%arg0: i32, %arg1: i32) -> (i32, i32) {
    %c0_i32 = arith.constant 0 : i32
    %c0_i32_0 = arith.constant 0 : i32
    %c0_i32_1 = arith.constant 0 : i32
    return %c0_i32, %c0_i32_0 : i32, i32
  }
  func.func @transform_4(%arg0: i32, %arg1: i32) -> (i32, i32, i32) {
    %c0_i32 = arith.constant 0 : i32
    %c0_i32_0 = arith.constant 0 : i32
    return %arg0, %c0_i32, %arg1 : i32, i32, i32
  }
  func.func @transform_5(%arg0: i32, %arg1: i32) -> (i32, i32, i32) {
    %c0_i32 = arith.constant 0 : i32
    %c0_i32_0 = arith.constant 0 : i32
    return %arg0, %c0_i32, %arg1 : i32, i32, i32
  }
}

</mosaic_0001>

<bundles_post_ra>
// kernel: tpu_custom_call.1
= control target key start
LH: loop header
LB: loop body
LE: loop exit
PB: predicated region body
PF: predicated region fallthrough
CT: control target
= control target key end

     0   :  { %s1253_s0 = inlined_call_operand.hbm [shape: f32[2,16,256], index: 0, kind: input, shape index: {}]   ;;  %s1254_s1 = inlined_call_operand.vmem [shape: f32[8,16], index: 1, kind: input, shape index: {}]   ;;  %s1255_s2 = inlined_call_operand.vmem [shape: f32[8,1], index: 2, kind: input, shape index: {}]   ;;  %s1256_s3 = inlined_call_operand.hbm [shape: f32[16,16], index: 3, kind: input, shape index: {}]   ;;  %s1257_s4 = inlined_call_operand.hbm [shape: f32[2,8,256], index: 4, kind: output, shape index: {0}]   ;;  %s1258_s5 = inlined_call_operand.hbm [shape: f32[2,16,256], index: 5, kind: output, shape index: {1}]  }
   0x1   :  { %1271 = sst [smem:[#allocation19_spill]] %s1256_s3 }
   0x2   :  { %1272 = sst [smem:[#allocation20_spill]] %s1258_s5 }
   0x3   :  { %11 = vsyncpa [#allocation3], 0 }
   0x4   :  { %13 = vsyncpa [#allocation3 + $0x1], 0 }
   0x5   :  { %14 = vsyncpa [#allocation6], 0 }
   0x6   :  { %15 = vsyncpa [#allocation4], 0 }
   0x7   :  { %17 = vsyncpa [#allocation4 + $0x1], 0 }
   0x8   :  { %18 = vsyncpa [#allocation9], 0 }
   0x9   :  { %20 = vsyncpa [#allocation9 + $0x1], 0  ;;  %s1002_s18 = smov 0   ;;  %s1004_s19 = smov 0  }
   0xa   :  { %s1006_s20 = smov 0   ;;  %s1008_s21 = smov 0  }
   0xb   :  { %s1010_s22 = smov 0   ;;  %s1012_s23 = smov 0  }
   0xc   :  { %s1014_s24 = smov 0   ;;  %s1016_s25 = smov 0  }
   0xd LB: > { %1273 = sst [smem:[#allocation14_spill]] %s929_s18  ;;  %s624_s26 = sadd.s32 4294967295, %s957_s25   ;;  %s957_s25 = sphi %s1016_s25, %s26_s25   ;;  %s953_s24 = sphi %s1014_s24, %s1304_s24   ;;  %s949_s23 = sphi %s1012_s23, %s1299_s23   ;;  %s945_s22 = sphi %s1010_s22, %s1303_s22   ;;  %s941_s21 = sphi %s1008_s21, %s1298_s21   ;;  %s937_s20 = sphi %s1006_s20, %s1302_s20   ;;  %s933_s19 = sphi %s1004_s19, %s1301_s19   ;;  %s929_s18 = sphi %s1002_s18, %s1300_s18  }
   0xe   : > { %1274 = sst [smem:[#allocation15_spill]] %s949_s23  ;;  %s625_s27 = sadd.s32 4294967294, %s957_s25  }
   0xf   : > { %1275 = sst [smem:[#allocation16_spill]] %s957_s25  ;;  %p54_p0 = scmp.ne.s32.totalorder %s937_s20, %s933_s19 }
  0x10   : > { %p55_p1 = scmp.eq.s32.totalorder %s957_s25, 0  ;;  %p60_p2 = scmp.ne.s32.totalorder %s933_s19, %s929_s18 }
  0x11   : > { %p1050_p3 = scmp.eq.s32.totalorder %s624_s26, 0  ;;  %p149_p4 = scmp.eq.s32.totalorder %s624_s26, 3 }
  0x12   : > { %p1054_p5 = por %p55_p1, %p54_p0  ;;  %p155_p6 = scmp.eq.s32.totalorder %s625_s27, 3 }
  0x13   : > { %p1060_p7 = por %p1050_p3, %p60_p2  ;;  %p1064_p8 = por %p149_p4, %p54_p0 }
  0x14   : > { %p1068_p9 = por %p155_p6, %p60_p2  ;;  %p626_p10 = scmp.ge.s32.totalorder %s957_s25, 1 }
  0x15   : > { %s1278_s6 = scalar_select %p1060_p7, 1, 0 }
  0x16   : > { %s1279_s7 = scalar_select %p1064_p8, 1, 0 }
  0x17   : > { %s1280_s8 = scalar_select %p1068_p9, 1, 0 }
  0x18   : > { %p190_p11 = scmp.lt.s32.totalorder %s957_s25, 5  ;;  %s959_s10 = smov [#allocation5]  }
  0x19   : > { %1281 = sst [smem:[#allocation17_spill]] %s1280_s8  ;;  %s208_s11 = sshll.u32 %s959_s10, 4  ;;  %s209_s11 = int_to_ptr.vmem [resolvable:$true] %s208_s11 }
  0x1a   : > { %p1074_p12 = pnand %p626_p10, %p190_p11  ;;  %p695_p0 = scmp.lt.s32.totalorder %s957_s25, 4 }
  0x1b   : > { %s784_s14 = scalar_lea.vmem %s209_s11, 256  ;;  %p792_p9 = scmp.lt.s32.totalorder %s209_s11, %s209_s11 }
  0x1c   : > { %s1282_s9 = scalar_select %p1074_p12, 1, 0 }
  0x1d   : > { %p679_p13 = pneg %p1074_p12  ;;  %p1089_p2 = pnand %p695_p0, %p1054_p5 }
  0x1e   : > { %p785_p6 = scmp.ne.s32.totalorder %s209_s11, %s784_s14  ;;  %p793_p8 = scmp.lt.s32.totalorder %s784_s14, %s784_s14 }
  0x1f   : > { %p1083_p1 = pnand %p679_p13, %p1050_p3 }
  0x20   : > { %p794_p7 = por %p793_p8, %p792_p9 }
  0x21   : > { %p775_p4 = pneg %p1083_p1 }
  0x23   : > { %p787_p10 = pnand %p785_p6, %p775_p4 }
  0x25   : > { %p788_p11 = pneg %p787_p10 }
  0x27   : > { %p795_p12 = pnand %p794_p7, %p788_p11 }
  0x29   : > { %798 = shalt.err (!%p795_p12)
}
  0x2a   : > { %s1263_s15 = smov 128   ;;  %s1264_s16 = smov 8  }
  0x2b   : > { %s1285_s3 = sld [smem:[#allocation19_spill]]  ;;  %s35_s27 = sadd.s32 1, %s949_s23 }
  0x2c   : > { %p36_p5 = scmp.ge.s32.totalorder %s35_s27, 2  ;;  %s38_s30 = sadd.s32 1, %s953_s24 }
  0x2d   : > { %s222_s10 = sand.u32 1, %s937_s20   ;;  %s630_s14 = sshll.u32 %s953_s24, 2 }
  0x2e   : > { %s1306_s27 = smov (%p36_p5, %s35_s27), 0  ;;  %s1308_s30 = smov (!%p36_p5, %s38_s30), %s953_s24 }
  0x2f   : > { %1286 = sst [smem:[#allocation18_spill]] %s1306_s27  ;;  %s43_s28 = ssub.s32 %s949_s23, %s1306_s27 }
  0x30   : > { %p40_p7 = scmp.ge.s32.totalorder %s1308_s30, 2  ;;  %s629_s12 = sshll.u32 %s222_s10, 4 }
  0x31   : > { %682 = dma.hbm_to_vmem [thread:$0]  (!%p1083_p1), %s1285_s3, 256, %s209_s11, [#allocation6], %s1263_s15, %s1263_s15, %s1264_s16  }
  0x32   : > { %s231_s8 = sadd.s32 %s949_s23, %s630_s14  ;;  %s1310_s30 = smov (%p40_p7, %s1308_s30), 0 }
  0x33   : > { %s631_s17 = sshll.u32 %s231_s8, 7  ;;  %s226_s11 = scalar_lea.vmem [#allocation2], %s629_s12 }
  0x34   : > { %s234_s26 = sshll.u32 %s226_s11, 4  ;;  %s42_s15 = ssub.s32 %s953_s24, %s1310_s30  ;;  %s235_s26 = int_to_ptr.vmem [resolvable:$true] %s234_s26 }
  0x35   : > { %s233_s18 = scalar_lea.hbm %s1253_s0, %s631_s17  ;;  %s44_s25 = sor.u32 %s43_s28, %s42_s15 }
  0x36   : > { %p45_p8 = scmp.eq.s32.totalorder %s44_s25, 0  ;;  %s223_s5 = scalar_lea.sflag [#allocation3], %s222_s10 }
  0x37   : > { %p801_p9 = pneg %p1089_p2  ;;  %s812_s27 = scalar_lea.vmem %s235_s26, 256 }
  0x38   : > { %p813_p12 = scmp.ne.s32.totalorder %s235_s26, %s812_s27  ;;  %s962_s14 = smov [#allocation2]  }
  0x39   : > { %s817_s23 = sshll.u32 %s962_s14, 4  ;;  %s818_s23 = int_to_ptr.vmem [resolvable:$false] %s817_s23 }
  0x3a   : > { %p815_p13 = pnand %p813_p12, %p801_p9  ;;  %s819_s8 = scalar_lea.vmem %s818_s23, 512 }
  0x3b   : > { %p820_p1 = scmp.lt.s32.totalorder %s235_s26, %s818_s23  ;;  %p821_p4 = scmp.lt.s32.totalorder %s819_s8, %s812_s27 }
  0x3c   : > { %p816_p0 = pneg %p815_p13 }
  0x3d   : > { %p822_p6 = por %p821_p4, %p820_p1 }
  0x3f   : > { %p823_p10 = pnand %p822_p6, %p816_p0 }
  0x41   : > { %826 = shalt.err (!%p823_p10)
}
  0x42   : > { %s963_s3 = smov 256   ;;  %s1287_s28 = smov 8  }
  0x43   : > { %s1288_s15 = smov 128   ;;  %s1289_s16 = sadd.s32 1, %s937_s20 }
  0x44   : > { %686 = dma.hbm_to_vmem [thread:$0]  (!%p1089_p2), %s233_s18, 256, %s235_s26, %s223_s5, %s963_s3, %s1288_s15, %s1287_s28  }
  0x45   : > { %s1130_s10 = scalar_select %p45_p8, %s937_s20, %s1289_s16  }
  0x46   : > { %p1290_p11 = scmp.ne.s32.totalorder %s1282_s9, 0 }
  0x47   : > { %s1135_s23 = sand.u32 (!%p1290_p11), 1, %s933_s19   ;;  %p1291_p5 = scmp.ne.s32.totalorder (!%p1290_p11), %s1278_s6, 0 }
  0x48   : > { %246 = sbr.rel (%p1290_p11) target bundleno = 318 (0x13e), region = 36  ;;  %s633_s13 = sshll.u32 (!%p1290_p11), %s1135_s23, 4 }
  0x49   : > { %s249_s27 = scalar_lea.sflag (!%p1290_p11), [#allocation3], %s1135_s23  ;;  %s252_s12 = scalar_lea.vmem (!%p1290_p11), [#allocation2], %s633_s13 }
  0x4d   : > { %912 = dma.done.wait (%p1291_p5), %s249_s27, 256  }
  0x4e   : > { %914 = vsyncadd (%p1291_p5), %s249_s27, 4294967040 }
  0x4f   : > { %916 = dma.done.wait (%p1050_p3), [#allocation6], 256  }
  0x50   : > { %918 = vsyncadd (%p1050_p3), [#allocation6], 4294967040  ;;  %v964_v0 = vmov 0.0   ;;  %vm965_vm0 = vmmov 0   ;;  %v966_v1 = vmov 0   ;;  %v289_v2 = vld [vmem:[%s252_s12 + $0x8] sm:$0xff] }
  0x51   : > { %655 = vmatprep.subr.mxu0 %v964_v0  ;;  %659 = vmatprep.mubr.msk.f32.mxu0 %vm965_vm0, %v964_v0  ;;  %v288_v3 = vld [vmem:[%s252_s12] sm:$0xff]  ;;  %vm297_vm1 = vcmask 130048   ;;  %v372_v7 = vld [vmem:[#allocation5 + $0x8] sm:$0xff]  ;;  %s642_s6 = sshll.u32 %s945_s22, 1  ;;  %s635_s9 = sshll.u32 %s1135_s23, 3 }
  0x52   : > { %772 = vset.pattern.permute.xlu0 %v966_v1  ;;  %656 = vmatpush3.msra.mxu0 %v289_v2  ;;  %v290_v4 = vld [vmem:[%s1254_s1] sm:$0xff]  ;;  %s474_s17 = sadd.s32 %s941_s21, %s642_s6  ;;  %s644_s11 = sshll.u32 %s945_s22, 2 }
  0x53   : > { %662 = vmatprep.subr.mxu1 %v289_v2  ;;  %657 = vmatprep.subr.mxu0 %v964_v0  ;;  %v371_v5 = vld [vmem:[#allocation5] sm:$0xff]  ;;  %s1161_s26 = scalar_lea.vmem [#allocation8], %s633_s13  ;;  %s643_s8 = sshll.u32 %s474_s17, 7 }
  0x54   : > { %663 = vmatpush3.msra.mxu1 %v289_v2  ;;  %v291_v6 = vld [vmem:[%s1255_s2] sm:$0xff]  ;;  %658 = vmatpush3.msra.mxu0 %v288_v3  ;;  %s492_s14 = sshll.u32 %s1161_s26, 4  ;;  %s489_s3 = sadd.s32 %s941_s21, %s644_s11  ;;  %s1165_s14 = int_to_ptr.vmem [resolvable:$true] %s492_s14 }
  0x55   : > { %664 = vmatprep.subr.mxu1 %v288_v3  ;;  %660 = vmatmul.mubr.msk.f32.vlgmr.msra.gmra.mxu0 %vm297_vm1, %v290_v4  ;;  %s280_s28 = scalar_lea.vmem [#allocation7], %s635_s9  ;;  %s1170_s22 = scalar_lea.hbm %s1257_s4, %s643_s8 }
  0x56   : > { %665 = vmatpush3.msra.mxu1 %v288_v3  ;;  %666 = vmatprep.mubr.msk.f32.mxu1 %vm297_vm1, %v371_v5  ;;  %s478_s15 = sshll.u32 %s280_s28, 4  ;;  %s645_s13 = sshll.u32 %s489_s3, 7  ;;  %s1172_s15 = int_to_ptr.vmem [resolvable:$true] %s478_s15 }
  0x57   : > { %294 = vperm.xlu0 %772, %v291_v6   ;;  %667 = vmatmul.mubr.msk.f32.vlgmr.msra.gmra.mxu1 %vm297_vm1, %v372_v7  ;;  %s1292_s5 = sld [smem:[#allocation20_spill]]  ;;  %s458_s25 = scalar_lea.sflag [#allocation4], %s1135_s23 }
  0x58   : > { %s827_s29 = scalar_lea.vmem %s1172_s15, 128  ;;  %p1293_p2 = scmp.ne.s32.totalorder %s1279_s7, 0 }
  0x59   : > { %p828_p3 = scmp.ne.s32.totalorder %s1172_s15, %s827_s29  ;;  %s967_s6 = smov [#allocation7]  }
  0x5a   : > { %s831_s9 = sshll.u32 %s967_s6, 4  ;;  %s832_s9 = int_to_ptr.vmem [resolvable:$false] %s831_s9 }
  0x5b   : > { %p829_p7 = pnand %p828_p3, %p1293_p2  ;;  %s833_s17 = scalar_lea.vmem %s832_s9, 256 }
  0x5c   : > { %p834_p9 = scmp.lt.s32.totalorder %s1172_s15, %s832_s9  ;;  %p835_p12 = scmp.lt.s32.totalorder %s833_s17, %s827_s29 }
  0x5d   : > { %s1178_s18 = scalar_lea.hbm %s1292_s5, %s645_s13  ;;  %p830_p8 = pneg %p829_p7 }
  0x5e   : > { %p836_p13 = por %p835_p12, %p834_p9 }
  0x60   : > { %p837_p0 = pnand %p836_p13, %p830_p8 }
  0xd2   : > { %v295_v8 = vpop.permute.xlu0 %294 }
 0x115   : > { %v367_v9 = vpop.f32.mrf.mxu0 }
 0x116   : > { %v368_v10 = vadd.f32 %v367_v9, %v295_v8 }
 0x117   : > { %v668_v11 = vpop.f32.mrf.mxu1  ;;  %v661_v12 = vpop.f32.mrf.mxu0 }
 0x118   : > { %454 = vst [vmem:[%s280_s28] sm:$0xff] %v368_v10  ;;  %456 = vst [vmem:[%s1161_s26 + $0x8] sm:$0xff] %v668_v11 }
 0x119   : > { %v445_v13 = vpop.f32.mrf.mxu1 }
 0x11a   : > { %840 = shalt.err (!%p837_p0)
}
 0x11b   : > { %s841_s11 = scalar_lea.hbm %s1170_s22, 128  ;;  %s845_s28 = scalar_lea.hbm %s1257_s4, 512 }
 0x11c   : > { %p842_p1 = scmp.ne.s32.totalorder %s1170_s22, %s841_s11  ;;  %p846_p10 = scmp.lt.s32.totalorder %s1170_s22, %s1257_s4 }
 0x11d   : > { %p847_p11 = scmp.lt.s32.totalorder %s845_s28, %s841_s11 }
 0x11e   : > { %p843_p4 = pnand %p842_p1, %p1293_p2 }
 0x11f   : > { %p848_p5 = por %p847_p11, %p846_p10 }
 0x120   : > { %p844_p6 = pneg %p843_p4 }
 0x122   : > { %p849_p3 = pnand %p848_p5, %p844_p6 }
 0x124   : > { %852 = shalt.err (!%p849_p3)
}
 0x125   : > { %675 = dma.vmem_to_hbm [thread:$0]  (%p1293_p2), %s1172_s15, 128, %s1170_s22, %s458_s25   ;;  %455 = vst [vmem:[%s1161_s26] sm:$0xff] %v445_v13 }
 0x126   : > { %s463_s13 = scalar_lea.sflag [#allocation9], %s1135_s23  ;;  %s853_s21 = scalar_lea.vmem %s1165_s14, 256 }
 0x127   : > { %p854_p7 = scmp.ne.s32.totalorder %s1165_s14, %s853_s21  ;;  %s968_s12 = smov [#allocation8]  }
 0x128   : > { %s857_s29 = sshll.u32 %s968_s12, 4  ;;  %s858_s29 = int_to_ptr.vmem [resolvable:$false] %s857_s29 }
 0x129   : > { %p855_p8 = pnand %p854_p7, %p1293_p2  ;;  %s859_s6 = scalar_lea.vmem %s858_s29, 512 }
 0x12a   : > { %p860_p12 = scmp.lt.s32.totalorder %s1165_s14, %s858_s29  ;;  %p861_p13 = scmp.lt.s32.totalorder %s859_s6, %s853_s21 }
 0x12b   : > { %p856_p9 = pneg %p855_p8 }
 0x12c   : > { %p862_p0 = por %p861_p13, %p860_p12 }
 0x12e   : > { %p863_p1 = pnand %p862_p0, %p856_p9 }
 0x130   : > { %866 = shalt.err (!%p863_p1)
}
 0x131   : > { %s867_s26 = scalar_lea.hbm %s1178_s18, 256  ;;  %s871_s25 = scalar_lea.hbm %s1292_s5, 1024 }
 0x132   : > { %p868_p4 = scmp.ne.s32.totalorder %s1178_s18, %s867_s26  ;;  %p872_p11 = scmp.lt.s32.totalorder %s1178_s18, %s1292_s5 }
 0x133   : > { %p873_p5 = scmp.lt.s32.totalorder %s871_s25, %s867_s26 }
 0x134   : > { %p869_p6 = pnand %p868_p4, %p1293_p2 }
 0x135   : > { %p874_p3 = por %p873_p5, %p872_p11 }
 0x136   : > { %p870_p10 = pneg %p869_p6 }
 0x138   : > { %p875_p7 = pnand %p874_p3, %p870_p10 }
 0x13a   : > { %878 = shalt.err (!%p875_p7)
}
 0x13b   : > { %s969_s11 = smov 128   ;;  %s970_s8 = smov 256  }
 0x13c   : > { %s971_s3 = smov 8  }
 0x13d   : > { %676 = dma.vmem_to_hbm [thread:$0]  (%p1293_p2), %s1165_s14, 256, %s1178_s18, %s463_s13, %s969_s11, %s970_s8, %s971_s3  }
 0x13e PF: > { %s1294_s28 = sld [smem:[#allocation16_spill]] }
 0x13f   : > { %s1295_s16 = sld [smem:[#allocation14_spill]] }
 0x140   : > { %s1296_s27 = sld [smem:[#allocation17_spill]] }
 0x144   : > { %p697_p8 = scmp.ge.s32.totalorder %s1294_s28, 2 }
 0x145   : > { %s507_s21 = sand.u32 1, %s1295_s16  }
 0x146   : > { %p1297_p9 = scmp.ne.s32.totalorder %s1296_s27, 0  ;;  %s508_s12 = scalar_lea.sflag [#allocation4], %s507_s21 }
 0x148   : > { %p688_p12 = pnand %p697_p8, %p1297_p9 }
 0x14a   : > { %p689_p13 = pneg %p688_p12 }
 0x14c   : > { %920 = dma.done.wait (%p689_p13), %s508_s12, 128  }
 0x14d   : > { %922 = vsyncadd (%p689_p13), %s508_s12, 4294967168  ;;  %s517_s29 = scalar_lea.sflag [#allocation9], %s507_s21 }
 0x14e   : > { %924 = dma.done.wait (%p689_p13), %s517_s29, 256  }
 0x14f   : > { %926 = vsyncadd (%p689_p13), %s517_s29, 4294967040  ;;  %s26_s25 = sadd.s32 1, %s1294_s28   ;;  %s1298_s21 = sld [smem:[#allocation15_spill]] }
 0x150   : > { %p23_p0 = scmp.ge.s32.totalorder %s26_s25, 6   ;;  %s1299_s23 = sld [smem:[#allocation18_spill]] }
 0x151   : > { %s1300_s18 = smov %s933_s19  ;;  %s1301_s19 = smov %s937_s20 }
 0x152   : > { %s1302_s20 = smov %s1130_s10  ;;  %s1303_s22 = smov %s953_s24 }
 0x153   : > { %s1304_s24 = smov %s1310_s30  ;;  %25 = sbr.rel (!%p23_p0) target bundleno = 13 (0xd), region = 102 }
 0x158   :  { %522 = vsyncpa [#allocation3], 1 }
 0x159   :  { %524 = vsyncpa [#allocation3 + $0x1], 1 }
 0x15a   :  { %525 = vsyncpa [#allocation6], 1 }
 0x15b   :  { %526 = vsyncpa [#allocation4], 1 }
 0x15c   :  { %528 = vsyncpa [#allocation4 + $0x1], 1 }
 0x15d   :  { %529 = vsyncpa [#allocation9], 1 }
 0x15e   :  { %531 = vsyncpa [#allocation9 + $0x1], 1 }

</bundles_post_ra>
